<compile_context>
chip_gen: v5e
topology: v5e:2x2
jax: 0.10.0
libtpu: 0.0.40
codegen_flags: <defaults>
</compile_context>

<pallas_src>
import functools

import jax
import jax.numpy as jnp
from jax import lax
from jax.experimental import pallas as pl
from jax.experimental.pallas import tpu as pltpu


def encoder_kernel(z_dim, x_ref, w1_ref, b1_ref, wh_ref, bh_ref, out_ref):
    # Cast x to bf16 in-kernel (VPU slot is free under MXU/EUP; DMA stays f32).
    x_bf = x_ref[...].astype(jnp.bfloat16)

    # Hidden layer: bf16 MXU matmul with f32 accumulation, f32 bias + tanh (EUP).
    h = jnp.tanh(
        jnp.dot(x_bf, w1_ref[...], preferred_element_type=jnp.float32)
        + b1_ref[...]
    )

    # Fused heads: one lane-dense [TB, out_w] matmul -> (mu || logvar || pad).
    heads = (
        jnp.dot(h.astype(wh_ref.dtype), wh_ref[...],
                preferred_element_type=jnp.float32)
        + bh_ref[...]
    )

    out_w = heads.shape[-1]
    if z_dim % 128 == 0 and out_w == 2 * z_dim:
        # Lane-aligned static split: exp only touches the sigma half (EUP/2).
        mu = heads[:, :z_dim]
        sigma = jnp.exp(0.5 * heads[:, z_dim:])
        out_ref[...] = jnp.concatenate([mu, sigma], axis=-1).astype(out_ref.dtype)
    else:
        # Unaligned z_dim: sigma lanes are [z_dim, 2*z_dim); pad lanes pass 0.
        lane = lax.broadcasted_iota(jnp.int32, heads.shape, 1)
        is_sigma = (lane >= z_dim) & (lane < 2 * z_dim)
        out_ref[...] = jnp.where(
            is_sigma, jnp.exp(0.5 * heads), heads
        ).astype(out_ref.dtype)


def _round_up(v, m):
    return ((v + m - 1) // m) * m


def _choose_block_b(b_pad8, cap):
    """Batch tile: multiple of 8, <= cap; prefer a divisor of b_pad8 (avoids a
    pad copy of x) and >= 2 grid steps (v7x has 2 TensorCores)."""
    cap = max(8, min(cap, b_pad8))
    cap -= cap % 8
    divisors = [d for d in range(8, cap + 1, 8) if b_pad8 % d == 0]
    if divisors:
        multi = [d for d in divisors if b_pad8 // d >= 2]
        best = max(multi) if multi else max(divisors)
        # Accept unless it would force pathologically many tiny grid steps.
        if best * 8 >= cap or best == b_pad8:
            return best
    return cap  # fall back: pad the batch up to a multiple of cap


def encoder_forward(x, w1, b1, wmu, bmu, wsig, bsig, *, block_b=2048):
    """Run the encoder. Returns (mu, sigma), each [B, z_dim] float32."""
    B, x_dim = x.shape
    hidden = w1.shape[1]
    Z = wmu.shape[1]

    # Fuse the two heads into one weight/bias, zero-padded to a 128-lane
    # multiple so the single output store is lane-dense.
    out_w = _round_up(2 * Z, 128)
    w_heads = jnp.zeros((hidden, out_w), jnp.float32)
    w_heads = w_heads.at[:, :Z].set(wmu).at[:, Z:2 * Z].set(wsig)
    b_heads = jnp.zeros((1, out_w), jnp.float32)
    b_heads = b_heads.at[:, :Z].set(bmu).at[:, Z:2 * Z].set(bsig)

    # Resident MXU weights in bf16 (accumulation stays f32 inside the kernel).
    w1_mm = w1.astype(jnp.bfloat16)
    wh_mm = w_heads.astype(jnp.bfloat16)

    # Batch tiling. x stays f32 here; the bf16 cast happens inside the kernel.
    b_pad8 = _round_up(B, 8)
    TB = _choose_block_b(b_pad8, block_b)
    B_pad = _round_up(b_pad8, TB)
    x_in = x if B_pad == B else jnp.pad(x, ((0, B_pad - B), (0, 0)))

    # VMEM budget: double-buffered x/out tiles + resident weights + temporaries.
    vmem_bytes = (
        2 * TB * x_dim * 4                                   # x tiles (f32)
        + 2 * TB * out_w * 4                                 # out tiles (f32)
        + 2 * (x_dim * hidden * 2 + hidden * 4
               + hidden * out_w * 2 + out_w * 4)             # weights/biases
        + 4 * TB * hidden * 4                                # h / bf16 temps
    )
    vmem_limit = int(min(48 << 20, max(16 << 20, 2 * vmem_bytes)))

    out = pl.pallas_call(
        functools.partial(encoder_kernel, Z),
        out_shape=jax.ShapeDtypeStruct((B_pad, out_w), jnp.float32),
        grid_spec=pltpu.PrefetchScalarGridSpec(
            num_scalar_prefetch=0,
            grid=(B_pad // TB,),
            in_specs=[
                pl.BlockSpec((TB, x_dim), lambda i: (i, 0)),       # x tile (f32)
                pl.BlockSpec((x_dim, hidden), lambda i: (0, 0)),   # W1 (resident)
                pl.BlockSpec((1, hidden), lambda i: (0, 0)),       # b1 (resident)
                pl.BlockSpec((hidden, out_w), lambda i: (0, 0)),   # W_heads
                pl.BlockSpec((1, out_w), lambda i: (0, 0)),        # b_heads
            ],
            out_specs=pl.BlockSpec((TB, out_w), lambda i: (i, 0)),
        ),
        compiler_params=pltpu.CompilerParams(
            dimension_semantics=("parallel",),
            vmem_limit_bytes=vmem_limit),
    )(x_in, w1_mm, b1, wh_mm, b_heads)

    mu = out[:B, :Z]            # slices of the lane-dense slab
    sigma = out[:B, Z:2 * Z]
    return mu, sigma


def init_params(key, x_dim, hidden_dim, z_dim):
    """Deterministic parameter init (synthetic; mirrors nn.Linear shapes)."""
    ks = jax.random.split(key, 6)
    scale1 = 1.0 / jnp.sqrt(x_dim)
    scale2 = 1.0 / jnp.sqrt(hidden_dim)
    # Stored as [in, out] (transpose of PyTorch's [out, in]).
    w1 = jax.random.uniform(ks[0], (x_dim, hidden_dim), jnp.float32, -scale1, scale1)
    b1 = jax.random.uniform(ks[1], (1, hidden_dim), jnp.float32, -scale1, scale1)
    wmu = jax.random.uniform(ks[2], (hidden_dim, z_dim), jnp.float32, -scale2, scale2)
    bmu = jax.random.uniform(ks[3], (1, z_dim), jnp.float32, -scale2, scale2)
    wsig = jax.random.uniform(ks[4], (hidden_dim, z_dim), jnp.float32, -scale2, scale2)
    bsig = jax.random.uniform(ks[5], (1, z_dim), jnp.float32, -scale2, scale2)
    return w1, b1, wmu, bmu, wsig, bsig


if __name__ == "__main__":
    # Small, TPU-friendly shapes consistent with the module's forward:
    # x: [batch, x_dim] -> mu, sigma: [batch, z_dim]
    B, X_DIM, HIDDEN, Z_DIM = 8, 64, 128, 32

    key = jax.random.PRNGKey(0)
    kx, kp = jax.random.split(key)
    x = jax.random.normal(kx, (B, X_DIM), jnp.float32)
    params = init_params(kp, X_DIM, HIDDEN, Z_DIM)

    mu, sigma = encoder_forward(x, *params)
    jax.block_until_ready((mu, sigma))

    # Pure-JAX f32 reference check (bf16 MXU operands -> loosened tolerance).
    w1, b1, wmu, bmu, wsig, bsig = params
    h_ref = jnp.tanh(x @ w1 + b1)
    mu_ref = h_ref @ wmu + bmu
    sigma_ref = jnp.sqrt(jnp.exp(h_ref @ wsig + bsig))
    assert mu.shape == (B, Z_DIM) and sigma.shape == (B, Z_DIM)
    assert jnp.allclose(mu, mu_ref, atol=2e-2, rtol=2e-2)
    assert jnp.allclose(sigma, sigma_ref, atol=2e-2, rtol=2e-2)
    assert bool(jnp.all(sigma > 0))  # positivity constraint enforced

    print("KERNEL_OK")
</pallas_src>

<mosaic_0001>
module attributes {stable_mosaic.version = 11 : i64} {
  func.func @encoder_kernel(%arg0: i32, %arg1: memref<8x64xf32, #tpu.memory_space<vmem>>, %arg2: memref<64x128xbf16, #tpu.memory_space<vmem>>, %arg3: memref<1x128xf32, #tpu.memory_space<vmem>>, %arg4: memref<128x128xbf16, #tpu.memory_space<vmem>>, %arg5: memref<1x128xf32, #tpu.memory_space<vmem>>, %arg6: memref<8x128xf32, #tpu.memory_space<vmem>>) attributes {dimension_semantics = [#tpu.dimension_semantics<parallel>], iteration_bounds = array<i64: 1>, scalar_prefetch = 0 : i64, scratch_operands = 0 : i64, tpu.core_type = #tpu.core_type<tc>, window_params = [{transform_indices = @transform_0, window_bounds = array<i64: 8, 64>}, {pipeline_mode = #tpu.pipeline_mode<synchronous>, transform_indices = @transform_1, window_bounds = array<i64: 64, 128>}, {pipeline_mode = #tpu.pipeline_mode<synchronous>, transform_indices = @transform_2, window_bounds = array<i64: 1, 128>}, {pipeline_mode = #tpu.pipeline_mode<synchronous>, transform_indices = @transform_3, window_bounds = array<i64: 128, 128>}, {pipeline_mode = #tpu.pipeline_mode<synchronous>, transform_indices = @transform_4, window_bounds = array<i64: 1, 128>}, {transform_indices = @transform_5, window_bounds = array<i64: 8, 128>}]} {
    %c0 = arith.constant 0 : index
    %c0_0 = arith.constant 0 : index
    %0 = vector.load %arg1[%c0, %c0_0] : memref<8x64xf32, #tpu.memory_space<vmem>>, vector<8x64xf32>
    %1 = arith.truncf %0 : vector<8x64xf32> to vector<8x64xbf16>
    %c0_1 = arith.constant 0 : index
    %c0_2 = arith.constant 0 : index
    %2 = vector.load %arg2[%c0_1, %c0_2] : memref<64x128xbf16, #tpu.memory_space<vmem>>, vector<64x128xbf16>
    %cst = arith.constant dense<0.000000e+00> : vector<8x128xf32>
    %3 = tpu.matmul %1, %2, %cst {dimension_numbers = #tpu.dot_dimension_numbers<[1], [0], [0], [1], [0, 0, 1, 1], [], []>} : vector<8x64xbf16>, vector<64x128xbf16>, vector<8x128xf32> -> vector<8x128xf32>
    %c0_3 = arith.constant 0 : index
    %c0_4 = arith.constant 0 : index
    %4 = vector.load %arg3[%c0_3, %c0_4] : memref<1x128xf32, #tpu.memory_space<vmem>>, vector<1x128xf32>
    %5 = vector.broadcast %4 : vector<1x128xf32> to vector<8x128xf32>
    %6 = arith.addf %3, %5 : vector<8x128xf32>
    %7 = math.tanh %6 : vector<8x128xf32>
    %8 = arith.truncf %7 : vector<8x128xf32> to vector<8x128xbf16>
    %c0_5 = arith.constant 0 : index
    %c0_6 = arith.constant 0 : index
    %9 = vector.load %arg4[%c0_5, %c0_6] : memref<128x128xbf16, #tpu.memory_space<vmem>>, vector<128x128xbf16>
    %cst_7 = arith.constant dense<0.000000e+00> : vector<8x128xf32>
    %10 = tpu.matmul %8, %9, %cst_7 {dimension_numbers = #tpu.dot_dimension_numbers<[1], [0], [0], [1], [0, 0, 1, 1], [], []>} : vector<8x128xbf16>, vector<128x128xbf16>, vector<8x128xf32> -> vector<8x128xf32>
    %c0_8 = arith.constant 0 : index
    %c0_9 = arith.constant 0 : index
    %11 = vector.load %arg5[%c0_8, %c0_9] : memref<1x128xf32, #tpu.memory_space<vmem>>, vector<1x128xf32>
    %12 = vector.broadcast %11 : vector<1x128xf32> to vector<8x128xf32>
    %13 = arith.addf %10, %12 : vector<8x128xf32>
    %14 = tpu.iota {dimensions = array<i32: 1>} : vector<8x128xi32>
    %c32_i32 = arith.constant 32 : i32
    %15 = vector.broadcast %c32_i32 : i32 to vector<8x128xi32>
    %16 = arith.cmpi sge, %14, %15 : vector<8x128xi32>
    %c64_i32 = arith.constant 64 : i32
    %17 = vector.broadcast %c64_i32 : i32 to vector<8x128xi32>
    %18 = arith.cmpi slt, %14, %17 : vector<8x128xi32>
    %19 = arith.andi %16, %18 : vector<8x128xi1>
    %cst_10 = arith.constant 5.000000e-01 : f32
    %20 = vector.broadcast %cst_10 : f32 to vector<8x128xf32>
    %21 = arith.mulf %20, %13 : vector<8x128xf32>
    %22 = math.exp %21 : vector<8x128xf32>
    %23 = arith.select %19, %22, %13 : vector<8x128xi1>, vector<8x128xf32>
    %c0_11 = arith.constant 0 : index
    %c0_12 = arith.constant 0 : index
    %24 = vector.load %arg6[%c0_11, %c0_12] : memref<8x128xf32, #tpu.memory_space<vmem>>, vector<8x128xf32>
    tpu.vector_store %arg6[%c0_11, %c0_12], %23 {strides = array<i32>} : memref<8x128xf32, #tpu.memory_space<vmem>>, vector<8x128xf32>,
    return
  }
  func.func @transform_0(%arg0: i32) -> (i32, i32) {
    %c0_i32 = arith.constant 0 : i32
    %c0_i32_0 = arith.constant 0 : i32
    return %arg0, %c0_i32 : i32, i32
  }
  func.func @transform_1(%arg0: i32) -> (i32, i32) {
    %c0_i32 = arith.constant 0 : i32
    %c0_i32_0 = arith.constant 0 : i32
    %c0_i32_1 = arith.constant 0 : i32
    return %c0_i32, %c0_i32_0 : i32, i32
  }
  func.func @transform_2(%arg0: i32) -> (i32, i32) {
    %c0_i32 = arith.constant 0 : i32
    %c0_i32_0 = arith.constant 0 : i32
    %c0_i32_1 = arith.constant 0 : i32
    return %c0_i32, %c0_i32_0 : i32, i32
  }
  func.func @transform_3(%arg0: i32) -> (i32, i32) {
    %c0_i32 = arith.constant 0 : i32
    %c0_i32_0 = arith.constant 0 : i32
    %c0_i32_1 = arith.constant 0 : i32
    return %c0_i32, %c0_i32_0 : i32, i32
  }
  func.func @transform_4(%arg0: i32) -> (i32, i32) {
    %c0_i32 = arith.constant 0 : i32
    %c0_i32_0 = arith.constant 0 : i32
    %c0_i32_1 = arith.constant 0 : i32
    return %c0_i32, %c0_i32_0 : i32, i32
  }
  func.func @transform_5(%arg0: i32) -> (i32, i32) {
    %c0_i32 = arith.constant 0 : i32
    %c0_i32_0 = arith.constant 0 : i32
    return %arg0, %c0_i32 : i32, i32
  }
}

</mosaic_0001>

<bundles_post_ra>
// kernel: tpu_custom_call.1
= control target key start
LH: loop header
LB: loop body
LE: loop exit
PB: predicated region body
PF: predicated region fallthrough
CT: control target
= control target key end

     0   :  { %10 = vsyncpa [#allocation3], 0  ;;  %s462_s0 = inlined_call_operand.hbm [shape: f32[8,64], index: 0, kind: input, shape index: {}]   ;;  %s463_s1 = inlined_call_operand.hbm [shape: bf16[64,128], index: 1, kind: input, shape index: {}]   ;;  %s464_s2 = inlined_call_operand.vmem [shape: f32[1,128], index: 2, kind: input, shape index: {}]   ;;  %s465_s3 = inlined_call_operand.hbm [shape: bf16[128,128], index: 3, kind: input, shape index: {}]   ;;  %s466_s4 = inlined_call_operand.vmem [shape: f32[1,128], index: 4, kind: input, shape index: {}]   ;;  %s467_s5 = inlined_call_operand.hbm [shape: f32[8,128], index: 5, kind: output, shape index: {}]  }
   0x1   :  { %11 = vsyncpa [#allocation6], 0  ;;  %s28_s20 = sshll.u32 %s463_s1, 4  ;;  %s29_s20 = int_to_ptr.hbm [resolvable:$true] %s28_s20 }
   0x2   :  { %12 = vsyncpa [#allocation4], 0  ;;  %s408_s21 = smov [#allocation5]   ;;  %s18_s25 = sshll.u32 %s462_s0, 4  ;;  %s19_s25 = int_to_ptr.hbm [resolvable:$true] %s18_s25 }
   0x3   :  { %s30_s22 = sshll.u32 %s408_s21, 4  ;;  %s409_s26 = smov 64   ;;  %s31_s22 = int_to_ptr.vmem [resolvable:$true] %s30_s22 }
   0x4   :  { %s410_s27 = smov 4   ;;  %s411_s28 = smov [#allocation2]  }
   0x5   :  { %36 = dma.hbm_to_vmem [thread:$0]  %s29_s20, 512, %s31_s22, [#allocation6], %s409_s26, %s409_s26, %s410_s27  }
   0x6   :  { %s20_s29 = sshll.u32 %s411_s28, 4  ;;  %s43_s7 = sshll.u32 %s465_s3, 4  ;;  %s21_s29 = int_to_ptr.vmem [resolvable:$true] %s20_s29  ;;  %s44_s7 = int_to_ptr.hbm [resolvable:$true] %s43_s7 }
   0x7   :  { %23 = dma.hbm_to_vmem [thread:$0]  %s19_s25, 128, %s21_s29, [#allocation3]  }
   0x8   :  { %s412_s1 = smov [#allocation7]  }
   0x9   :  { %s45_s8 = sshll.u32 %s412_s1, 4  ;;  %s46_s8 = int_to_ptr.vmem [resolvable:$true] %s45_s8 }
   0xa   :  { %51 = dma.hbm_to_vmem [thread:$0]  %s44_s7, 1024, %s46_s8, [#allocation6], %s409_s26, %s409_s26, %s410_s27  }
   0xb   :  { %402 = dma.done.wait [#allocation3], 128  }
   0xc   :  { %403 = vsyncadd [#allocation3], 4294967168 }
   0xd   :  { %404 = dma.done.wait [#allocation6], 1536  }
   0xe   :  { %405 = vsyncadd [#allocation6], 4294965760  ;;  %v285_v0 = vld [vmem:[#allocation5 + $0x18] sm:$0xff]  ;;  %v284_v2 = vld [vmem:[#allocation5 + $0x10] sm:$0xff]  ;;  %vm105_vm0 = vcmask 523264   ;;  %v205_v22 = vlaneseq  ;;  %s222_s14 = sshll.u32 %s467_s5, 4  ;;  %s223_s14 = int_to_ptr.hbm [resolvable:$true] %s222_s14 }
   0xf   :  { %v293_v1 = vld [vmem:[#allocation7 + $0x38] sm:$0xff]  ;;  %113 = vmatpush.bf16.msra.mxu0 %v285_v0  ;;  %v292_v3 = vld [vmem:[#allocation7 + $0x30] sm:$0xff]  ;;  %v283_v4 = vld [vmem:[#allocation5 + $0x8] sm:$0xff] }
  0x10   :  { %192 = vmatpush.bf16.msra.mxu1 %v293_v1  ;;  %v291_v5 = vld [vmem:[#allocation7 + $0x28] sm:$0xff]  ;;  %v282_v6 = vld [vmem:[#allocation5] sm:$0xff]  ;;  %v67_v7 = vld [vmem:[#allocation2] sm:$0xff]  ;;  %v206_v25 = vand.u32 127, %v205_v22 }
  0x11   :  { %v290_v8 = vld [vmem:[#allocation7 + $0x20] sm:$0xff]  ;;  %v68_v9 = vpack.c.bf16 %v67_v7, %v67_v7  ;;  %v289_v10 = vld [vmem:[#allocation7 + $0x18] sm:$0xff]  ;;  %v288_v11 = vld [vmem:[#allocation7 + $0x10] sm:$0xff] }
  0x12   :  { %v287_v12 = vld [vmem:[#allocation7 + $0x8] sm:$0xff]  ;;  %v286_v13 = vld [vmem:[#allocation7] sm:$0xff]  ;;  %v300_v14 = vld [vmem:[%s464_s2] ss:$0 sm:$0xff]  ;;  %vm207_vm1 = vcmp.ge.s32.totalorder %v206_v25, 32  ;;  %vm208_vm2 = vcmp.lt.s32.totalorder %v206_v25, 64 }
  0x13   :  { %114 = vmatpush.bf16.msra.mxu0 %v284_v2  ;;  %v301_v20 = vld [vmem:[%s466_s4] ss:$0 sm:$0xff]  ;;  %s413_s2 = smov [#allocation8]   ;;  %vm209_vm3 = vmand %vm207_vm1, %vm208_vm2 }
  0x14   :  { %193 = vmatpush.bf16.msra.mxu1 %v292_v3  ;;  %s220_s11 = sshll.u32 %s413_s2, 4  ;;  %s221_s11 = int_to_ptr.vmem [resolvable:$true] %s220_s11 }
  0x17   :  { %115 = vmatpush.bf16.msra.mxu0 %v283_v4 }
  0x18   :  { %194 = vmatpush.bf16.msra.mxu1 %v291_v5 }
  0x1b   :  { %116 = vmatpush.bf16.msra.mxu0 %v282_v6 }
  0x1c   :  { %195 = vmatpush.bf16.msra.mxu1 %v290_v8 }
  0x1e   :  { %249 = vmatmul.msk.bf16.vlgmr.msra.gmra.mxu0 %vm105_vm0, %v68_v9 }
  0x20   :  { %196 = vmatpush.bf16.msra.mxu1 %v289_v10 }
  0x24   :  { %197 = vmatpush.bf16.msra.mxu1 %v288_v11 }
  0x28   :  { %198 = vmatpush.bf16.msra.mxu1 %v287_v12 }
  0x2c   :  { %199 = vmatpush.bf16.msra.mxu1 %v286_v13 }
  0x9b   :  { %v118_v15 = vpop.f32.mrf.mxu0 }
  0x9c   :  { %v119_v16 = vadd.f32 %v300_v14, %v118_v15 }
  0x9e   :  { %302 = vtanh.f32 %v119_v16 }
  0xa3   :  { %v120_v17 = vpop.f32.mrf.mxu0 }
  0xa4   :  { %v303_v18 = vpop.eup %302 }
  0xa5   :  { %v123_v19 = vpack.c.bf16 %v303_v18, %v303_v18 }
  0xa7   :  { %200 = vmatmul.bf16.vlgmr.msra.gmra.mxu1 %v123_v19 }
 0x124   :  { %v201_v21 = vpop.f32.mrf.mxu1 }
 0x125   :  { %v202_v23 = vadd.f32 %v301_v20, %v201_v21 }
 0x127   :  { %v210_v24 = vmul.f32 0.5, %v202_v23 }
 0x129   :  { %v211_v26 = vmul.f32 1.442695, %v210_v24 }
 0x12b   :  { %304 = vpow2.f32 %v211_v26 }
 0x12c   :  { %v203_v27 = vpop.f32.mrf.mxu1 }
 0x131   :  { %v305_v28 = vpop.eup %304 }
 0x132   :  { %v213_v29 = vsel %vm209_vm3, %v305_v28, %v202_v23 }
 0x133   :  { %214 = vst [vmem:[#allocation8] sm:$0xff] %v213_v29 }
 0x134   :  { %225 = dma.vmem_to_hbm [thread:$0]  %s221_s11, 128, %s223_s14, [#allocation4]  }
 0x135   :  { %406 = dma.done.wait [#allocation4], 128  }
 0x136   :  { %407 = vsyncadd [#allocation4], 4294967168 }
 0x137   :  { %230 = vsyncpa [#allocation3], 1 }
 0x138   :  { %231 = vsyncpa [#allocation6], 1 }
 0x139   :  { %232 = vsyncpa [#allocation4], 1 }

</bundles_post_ra>
